<compile_context>
chip_gen: v7x
topology: tpu7x:2x2x1
jax: 0.10.0
libtpu: 0.0.40
codegen_flags: <defaults>
</compile_context>

<pallas_src>
import jax
import jax.numpy as jnp
from jax.experimental import pallas as pl
from jax.experimental.pallas import tpu as pltpu


def _biaffine_kernel(x1_ref, x2_ref, wbf_ref, sel_ref, wl1_ref, wl2_ref, b_ref, out_ref):
    x1 = x1_ref[...]                      # (TN, F)  native dtype (bf16 ok)
    x2 = x2_ref[...]                      # (TN, F)
    o = out_ref.shape[-1]

    # ---- Bilinear term, fully on the MXU -----------------------------------
    # z[n, o*F + j] = sum_i x1[n, i] * Wb[o, i, j]   (one lane-full matmul)
    z = jnp.dot(x1, wbf_ref[...], preferred_element_type=jnp.float32)     # (TN, O*F)
    # Lane-replicate x2 O times so the per-o reduction over j becomes a matmul
    # with the block-diagonal ones selector (MXU) instead of O XLU reductions.
    x2_rep = jnp.concatenate([x2] * o, axis=-1)                           # (TN, O*F)
    bil = jnp.dot(z * x2_rep, sel_ref[...],
                  preferred_element_type=jnp.float32)                     # (TN, O)

    # ---- Linear term: two K=F matmuls, no concat(x1, x2) -------------------
    lin = (jnp.dot(x1, wl1_ref[...], preferred_element_type=jnp.float32)
           + jnp.dot(x2, wl2_ref[...], preferred_element_type=jnp.float32)
           + b_ref[...])                                                  # (TN, O)

    # Single dense (TN, O) store per tile.
    out_ref[...] = (bil + lin).astype(out_ref.dtype)


def _round_up(x, m):
    return (x + m - 1) // m * m


def biaffine_attention(x1, x2, wb, wl, b, *, block_n=512):
    """x1, x2: (N, *, F).  wb: (O, F, F).  wl: (O, 2F).  b: (O,).  Returns (N, *, O) f32."""
    assert x1.shape == x2.shape
    lead_shape = x1.shape[:-1]
    f = x1.shape[-1]
    o = wb.shape[0]

    # Flatten any leading dims to a single row axis (module allows (N, *, F)).
    x1 = x1.reshape(-1, f)
    x2 = x2.reshape(-1, f)
    n = x1.shape[0]

    # --- One-time weight re-layout outside the kernel (glue, not compute) ---
    wb_flat = jnp.transpose(wb, (1, 0, 2)).reshape(f, o * f)      # (F, O*F)
    wl1 = jnp.transpose(wl[:, :f])                                # (F, O)
    wl2 = jnp.transpose(wl[:, f:])                                # (F, O)
    b2 = b.reshape(1, o).astype(jnp.float32)                      # (1, O)
    # Block-diagonal ones selector: column o sums lanes o*F .. (o+1)*F - 1.
    sel = jnp.repeat(jnp.eye(o, dtype=jnp.float32), f, axis=0)    # (O*F, O)

    # --- Batch tiling: sublane-aligned row tiles, weights VMEM-resident -----
    tn = min(block_n, _round_up(n, 8))
    n_pad = _round_up(n, tn)
    if n_pad != n:
        pad = ((0, n_pad - n), (0, 0))
        x1 = jnp.pad(x1, pad)
        x2 = jnp.pad(x2, pad)

    grid = (n_pad // tn,)
    row_spec = pl.BlockSpec((tn, f), lambda i: (i, 0))

    def const_spec(shape):
        # Constant block index => weight stays resident in VMEM across the grid.
        return pl.BlockSpec(shape, lambda i: (0, 0))

    out = pl.pallas_call(
        _biaffine_kernel,
        out_shape=jax.ShapeDtypeStruct((n_pad, o), jnp.float32),
        grid=grid,
        in_specs=[row_spec,                      # x1 tile
                  row_spec,                      # x2 tile
                  const_spec((f, o * f)),        # Wb_flat
                  const_spec((o * f, o)),        # selector S
                  const_spec((f, o)),            # Wl1
                  const_spec((f, o)),            # Wl2
                  const_spec((1, o))],           # bias
        out_specs=pl.BlockSpec((tn, o), lambda i: (i, 0)),
        compiler_params=pltpu.CompilerParams(
            dimension_semantics=("parallel",)),  # shards batch across TCs on v7x
    )(x1, x2, wb_flat, sel, wl1, wl2, b2)

    return out[:n].reshape(*lead_shape, o)


def _reference(x1, x2, wb, wl, b):
    bil = jnp.einsum("ni,oij,nj->no", x1, wb, x2)
    lin = jnp.concatenate([x1, x2], axis=-1) @ wl.T + b
    return bil + lin


if __name__ == "__main__":
    batch, in_features, out_features = 32, 32, 4

    key = jax.random.PRNGKey(0)
    k1, k2, k3, k4, k5 = jax.random.split(key, 5)

    # Deterministic parameter init (uniform, torch-like bound 1/sqrt(in_features)).
    bound = 1.0 / (in_features ** 0.5)
    x1 = jax.random.normal(k1, (batch, in_features), dtype=jnp.float32)
    x2 = jax.random.normal(k2, (batch, in_features), dtype=jnp.float32)
    wb = jax.random.uniform(k3, (out_features, in_features, in_features),
                            minval=-bound, maxval=bound, dtype=jnp.float32)
    wl = jax.random.uniform(k4, (out_features, 2 * in_features),
                            minval=-bound, maxval=bound, dtype=jnp.float32)
    b = jax.random.uniform(k5, (out_features,),
                           minval=-bound, maxval=bound, dtype=jnp.float32)

    out = biaffine_attention(x1, x2, wb, wl, b)
    out = jax.block_until_ready(out)

    ref = _reference(x1, x2, wb, wl, b)
    assert out.shape == (batch, out_features)
    assert jnp.allclose(out, ref, atol=1e-4, rtol=1e-4), "mismatch vs reference"

    print("KERNEL_OK")
</pallas_src>

<mosaic_0001>
module attributes {stable_mosaic.version = 11 : i64} {
  func.func @_biaffine_kernel(%arg0: i32, %arg1: memref<32x32xf32, #tpu.memory_space<vmem>>, %arg2: memref<32x32xf32, #tpu.memory_space<vmem>>, %arg3: memref<32x128xf32, #tpu.memory_space<vmem>>, %arg4: memref<128x4xf32, #tpu.memory_space<vmem>>, %arg5: memref<32x4xf32, #tpu.memory_space<vmem>>, %arg6: memref<32x4xf32, #tpu.memory_space<vmem>>, %arg7: memref<1x4xf32, #tpu.memory_space<vmem>>, %arg8: memref<32x4xf32, #tpu.memory_space<vmem>>) attributes {dimension_semantics = [#tpu.dimension_semantics<parallel>], iteration_bounds = array<i64: 1>, scalar_prefetch = 0 : i64, scratch_operands = 0 : i64, tpu.core_type = #tpu.core_type<tc>, window_params = [{transform_indices = @transform_0, window_bounds = array<i64: 32, 32>}, {transform_indices = @transform_1, window_bounds = array<i64: 32, 32>}, {pipeline_mode = #tpu.pipeline_mode<synchronous>, transform_indices = @transform_2, window_bounds = array<i64: 32, 128>}, {pipeline_mode = #tpu.pipeline_mode<synchronous>, transform_indices = @transform_3, window_bounds = array<i64: 128, 4>}, {pipeline_mode = #tpu.pipeline_mode<synchronous>, transform_indices = @transform_4, window_bounds = array<i64: 32, 4>}, {pipeline_mode = #tpu.pipeline_mode<synchronous>, transform_indices = @transform_5, window_bounds = array<i64: 32, 4>}, {pipeline_mode = #tpu.pipeline_mode<synchronous>, transform_indices = @transform_6, window_bounds = array<i64: 1, 4>}, {transform_indices = @transform_7, window_bounds = array<i64: 32, 4>}]} {
    %c0 = arith.constant 0 : index
    %c0_0 = arith.constant 0 : index
    %0 = vector.load %arg1[%c0, %c0_0] : memref<32x32xf32, #tpu.memory_space<vmem>>, vector<32x32xf32>
    %c0_1 = arith.constant 0 : index
    %c0_2 = arith.constant 0 : index
    %1 = vector.load %arg2[%c0_1, %c0_2] : memref<32x32xf32, #tpu.memory_space<vmem>>, vector<32x32xf32>
    %c0_3 = arith.constant 0 : index
    %c0_4 = arith.constant 0 : index
    %2 = vector.load %arg3[%c0_3, %c0_4] : memref<32x128xf32, #tpu.memory_space<vmem>>, vector<32x128xf32>
    %cst = arith.constant dense<0.000000e+00> : vector<32x128xf32>
    %3 = tpu.matmul %0, %2, %cst {dimension_numbers = #tpu.dot_dimension_numbers<[1], [0], [0], [1], [0, 0, 1, 1], [], []>} : vector<32x32xf32>, vector<32x128xf32>, vector<32x128xf32> -> vector<32x128xf32>
    %4 = tpu.concatenate %1, %1, %1, %1 in 1 : vector<32x32xf32>, vector<32x32xf32>, vector<32x32xf32>, vector<32x32xf32> -> vector<32x128xf32>
    %5 = arith.mulf %3, %4 : vector<32x128xf32>
    %c0_5 = arith.constant 0 : index
    %c0_6 = arith.constant 0 : index
    %6 = vector.load %arg4[%c0_5, %c0_6] : memref<128x4xf32, #tpu.memory_space<vmem>>, vector<128x4xf32>
    %cst_7 = arith.constant dense<0.000000e+00> : vector<32x4xf32>
    %7 = tpu.matmul %5, %6, %cst_7 {dimension_numbers = #tpu.dot_dimension_numbers<[1], [0], [0], [1], [0, 0, 1, 1], [], []>} : vector<32x128xf32>, vector<128x4xf32>, vector<32x4xf32> -> vector<32x4xf32>
    %c0_8 = arith.constant 0 : index
    %c0_9 = arith.constant 0 : index
    %8 = vector.load %arg5[%c0_8, %c0_9] : memref<32x4xf32, #tpu.memory_space<vmem>>, vector<32x4xf32>
    %cst_10 = arith.constant dense<0.000000e+00> : vector<32x4xf32>
    %9 = tpu.matmul %0, %8, %cst_10 {dimension_numbers = #tpu.dot_dimension_numbers<[1], [0], [0], [1], [0, 0, 1, 1], [], []>} : vector<32x32xf32>, vector<32x4xf32>, vector<32x4xf32> -> vector<32x4xf32>
    %c0_11 = arith.constant 0 : index
    %c0_12 = arith.constant 0 : index
    %10 = vector.load %arg6[%c0_11, %c0_12] : memref<32x4xf32, #tpu.memory_space<vmem>>, vector<32x4xf32>
    %cst_13 = arith.constant dense<0.000000e+00> : vector<32x4xf32>
    %11 = tpu.matmul %1, %10, %cst_13 {dimension_numbers = #tpu.dot_dimension_numbers<[1], [0], [0], [1], [0, 0, 1, 1], [], []>} : vector<32x32xf32>, vector<32x4xf32>, vector<32x4xf32> -> vector<32x4xf32>
    %12 = arith.addf %9, %11 : vector<32x4xf32>
    %c0_14 = arith.constant 0 : index
    %c0_15 = arith.constant 0 : index
    %13 = vector.load %arg7[%c0_14, %c0_15] : memref<1x4xf32, #tpu.memory_space<vmem>>, vector<1x4xf32>
    %14 = vector.broadcast %13 : vector<1x4xf32> to vector<32x4xf32>
    %15 = arith.addf %12, %14 : vector<32x4xf32>
    %16 = arith.addf %7, %15 : vector<32x4xf32>
    %c0_16 = arith.constant 0 : index
    %c0_17 = arith.constant 0 : index
    %17 = vector.load %arg8[%c0_16, %c0_17] : memref<32x4xf32, #tpu.memory_space<vmem>>, vector<32x4xf32>
    tpu.vector_store %arg8[%c0_16, %c0_17], %16 {strides = array<i32>} : memref<32x4xf32, #tpu.memory_space<vmem>>, vector<32x4xf32>,
    return
  }
  func.func @transform_0(%arg0: i32) -> (i32, i32) {
    %c0_i32 = arith.constant 0 : i32
    %c0_i32_0 = arith.constant 0 : i32
    return %arg0, %c0_i32 : i32, i32
  }
  func.func @transform_1(%arg0: i32) -> (i32, i32) {
    %c0_i32 = arith.constant 0 : i32
    %c0_i32_0 = arith.constant 0 : i32
    return %arg0, %c0_i32 : i32, i32
  }
  func.func @transform_2(%arg0: i32) -> (i32, i32) {
    %c0_i32 = arith.constant 0 : i32
    %c0_i32_0 = arith.constant 0 : i32
    %c0_i32_1 = arith.constant 0 : i32
    return %c0_i32, %c0_i32_0 : i32, i32
  }
  func.func @transform_3(%arg0: i32) -> (i32, i32) {
    %c0_i32 = arith.constant 0 : i32
    %c0_i32_0 = arith.constant 0 : i32
    %c0_i32_1 = arith.constant 0 : i32
    return %c0_i32, %c0_i32_0 : i32, i32
  }
  func.func @transform_4(%arg0: i32) -> (i32, i32) {
    %c0_i32 = arith.constant 0 : i32
    %c0_i32_0 = arith.constant 0 : i32
    %c0_i32_1 = arith.constant 0 : i32
    return %c0_i32, %c0_i32_0 : i32, i32
  }
  func.func @transform_5(%arg0: i32) -> (i32, i32) {
    %c0_i32 = arith.constant 0 : i32
    %c0_i32_0 = arith.constant 0 : i32
    %c0_i32_1 = arith.constant 0 : i32
    return %c0_i32, %c0_i32_0 : i32, i32
  }
  func.func @transform_6(%arg0: i32) -> (i32, i32) {
    %c0_i32 = arith.constant 0 : i32
    %c0_i32_0 = arith.constant 0 : i32
    %c0_i32_1 = arith.constant 0 : i32
    return %c0_i32, %c0_i32_0 : i32, i32
  }
  func.func @transform_7(%arg0: i32) -> (i32, i32) {
    %c0_i32 = arith.constant 0 : i32
    %c0_i32_0 = arith.constant 0 : i32
    return %arg0, %c0_i32 : i32, i32
  }
}

</mosaic_0001>

<bundles_post_ra>
// kernel: tpu_custom_call.1
= control target key start
LH: loop header
LB: loop body
LE: loop exit
PB: predicated region body
PF: predicated region fallthrough
CT: control target
= control target key end

     0   :  { %vm38_vm0 = vcmask 261120   ;;  %s709_s13 = smov 32   ;;  %s710_s15 = smov 64   ;;  %vm180_vm1 = vcmask 523264   ;;  %vm185_vm2 = vcmask 785408   ;;  %vm492_vm3 = vcmask 31744   ;;  %s943_s2 = inlined_call_operand.vmem [shape: f32[32,128], index: 2, kind: input, shape index: {}]   ;;  %s944_s0 = inlined_call_operand.vmem [shape: f32[32,32], index: 0, kind: input, shape index: {}]   ;;  %s945_s1 = inlined_call_operand.vmem [shape: f32[32,32], index: 1, kind: input, shape index: {}]   ;;  %s946_s3 = inlined_call_operand.vmem [shape: f32[128,4], index: 3, kind: input, shape index: {}]   ;;  %s947_s5 = inlined_call_operand.vmem [shape: f32[32,4], index: 5, kind: input, shape index: {}]   ;;  %s948_s4 = inlined_call_operand.vmem [shape: f32[32,4], index: 4, kind: input, shape index: {}]   ;;  %s949_s6 = inlined_call_operand.vmem [shape: f32[1,4], index: 6, kind: input, shape index: {}]   ;;  %s950_s7 = inlined_call_operand.vmem [shape: f32[32,4], index: 7, kind: output, shape index: {}]  }
   0x1   :  { %v34_v0 = vld [vmem:[%s943_s2] sm:$0xff]  ;;  %v35_v1 = vld [vmem:[%s943_s2 + $0x8] sm:$0xff]  ;;  %v36_v2 = vld [vmem:[%s943_s2 + $0x10] sm:$0xff] }
   0x2   :  { %v638_v3 = vpack.c.bf16 %v35_v1, %v34_v0  ;;  %v37_v4 = vld [vmem:[%s943_s2 + $0x18] sm:$0xff]  ;;  %v767_v5 = vld [vmem:[%s944_s0] sm:$0xff]  ;;  %v781_v8 = vld [vmem:[%s945_s1 + $0x8] sm:$0xff] }
   0x3   :  { %v642_v6 = vpack.c.bf16 %v37_v4, %v36_v2  ;;  %566 = vmatprep.mubr.msk.f32.mxu0 %vm38_vm0, %v767_v5  ;;  %v774_v7 = vld [vmem:[%s945_s1] sm:$0xff]  ;;  %v195_v10 = vld [vmem:[%s946_s3 + $0x8] sm:$0xff]  ;;  %v196_v11 = vld [vmem:[%s946_s3 + $0x10] sm:$0xff] }
   0x4   :  { %639 = vmatprep.subr.bf16.mxu0 %v638_v3  ;;  %140 = vrot.lane.b32.xlu0 %v774_v7, %s709_s13  ;;  %v194_v9 = vld [vmem:[%s946_s3] sm:$0xff]  ;;  %v197_v13 = vld [vmem:[%s946_s3 + $0x18] sm:$0xff]  ;;  %v215_v15 = vld [vmem:[%s947_s5 + $0x8] sm:$0xff] }
   0x5   :  { %641 = vmatpush3.bf16.msra.mxu0 %v638_v3  ;;  %152 = vrot.lane.b32.xlu1 %v774_v7, %s710_s15  ;;  %v662_v12 = vpack.c.bf16 %v195_v10, %v194_v9  ;;  %v214_v14 = vld [vmem:[%s947_s5] sm:$0xff]  ;;  %v666_v16 = vpack.c.bf16 %v197_v13, %v196_v11  ;;  %v199_v19 = vld [vmem:[%s946_s3 + $0x28] sm:$0xff]  ;;  %v216_v20 = vld [vmem:[%s947_s5 + $0x10] sm:$0xff] }
   0x6   :  { %643 = vmatprep.subr.bf16.mxu0 %v642_v6  ;;  %v646_v17 = vpack.c.bf16 %v215_v15, %v214_v14  ;;  %v198_v18 = vld [vmem:[%s946_s3 + $0x20] sm:$0xff]  ;;  %v217_v21 = vld [vmem:[%s947_s5 + $0x18] sm:$0xff]  ;;  %v27_v22 = vld [vmem:[%s944_s0 + $0x8] sm:$0xff]  ;;  %s711_s5 = smov 96  }
   0x7   :  { %663 = vmatprep.subr.bf16.mxu1 %v662_v12  ;;  %v28_v23 = vld [vmem:[%s944_s0 + $0x10] sm:$0xff]  ;;  %v670_v24 = vpack.c.bf16 %v199_v19, %v198_v18  ;;  %v650_v25 = vpack.c.bf16 %v217_v21, %v216_v20  ;;  %v201_v27 = vld [vmem:[%s946_s3 + $0x38] sm:$0xff]  ;;  %v210_v28 = vld [vmem:[%s948_s4] sm:$0xff] }
   0x8   :  { %142 = vrot.lane.b32.xlu0 %v781_v8, %s709_s13  ;;  %665 = vmatpush3.bf16.msra.mxu1 %v662_v12  ;;  %v200_v26 = vld [vmem:[%s946_s3 + $0x30] sm:$0xff]  ;;  %v211_v29 = vld [vmem:[%s948_s4 + $0x8] sm:$0xff]  ;;  %v29_v30 = vld [vmem:[%s944_s0 + $0x18] sm:$0xff] }
   0x9   :  { %645 = vmatpush3.bf16.msra.mxu0 %v642_v6  ;;  %154 = vrot.lane.b32.xlu1 %v781_v8, %s710_s15  ;;  %v849_v31 = vld [vmem:[%s945_s1 + $0x10] sm:$0xff]  ;;  %v854_v32 = vld [vmem:[%s945_s1 + $0x18] sm:$0xff]  ;;  %v674_v33 = vpack.c.bf16 %v201_v27, %v200_v26  ;;  %v654_v34 = vpack.c.bf16 %v211_v29, %v210_v28  ;;  %v202_v35 = vld [vmem:[%s946_s3 + $0x40] sm:$0xff] }
   0xa   :  { %647 = vmatprep.subr.bf16.mxu0 %v646_v17  ;;  %667 = vmatprep.subr.bf16.mxu1 %v666_v16  ;;  %v203_v36 = vld [vmem:[%s946_s3 + $0x48] sm:$0xff]  ;;  %v212_v37 = vld [vmem:[%s948_s4 + $0x10] sm:$0xff]  ;;  %v213_v38 = vld [vmem:[%s948_s4 + $0x18] sm:$0xff] }
   0xb   :  { %v678_v39 = vpack.c.bf16 %v203_v36, %v202_v35  ;;  %v658_v40 = vpack.c.bf16 %v213_v38, %v212_v37  ;;  %v204_v41 = vld [vmem:[%s946_s3 + $0x50] sm:$0xff]  ;;  %v205_v42 = vld [vmem:[%s946_s3 + $0x58] sm:$0xff]  ;;  %v206_v44 = vld [vmem:[%s946_s3 + $0x60] sm:$0xff] }
   0xc   :  { %567 = vmatmul.mubr.msk.f32.vlgmr.msra.gmra.mrb[0].mxu0 %vm38_vm0, %v27_v22  ;;  %164 = vrot.lane.b32.xlu0 %v774_v7, %s711_s5  ;;  %v682_v43 = vpack.c.bf16 %v205_v42, %v204_v41  ;;  %v207_v45 = vld [vmem:[%s946_s3 + $0x68] sm:$0xff]  ;;  %v208_v47 = vld [vmem:[%s946_s3 + $0x70] sm:$0xff]  ;;  %v209_v48 = vld [vmem:[%s946_s3 + $0x78] sm:$0xff] }
   0xd   :  { %569 = vmatprep.mubr.msk.f32.mxu0 %vm38_vm0, %v28_v23  ;;  %166 = vrot.lane.b32.xlu1 %v781_v8, %s711_s5  ;;  %v686_v46 = vpack.c.bf16 %v207_v45, %v206_v44  ;;  %v690_v49 = vpack.c.bf16 %v209_v48, %v208_v47 }
   0xe   :  { %669 = vmatpush3.bf16.msra.mxu1 %v666_v16  ;;  %649 = vmatpush3.bf16.msra.mxu0 %v646_v17 }
   0xf   :  { %671 = vmatprep.subr.bf16.mxu1 %v670_v24  ;;  %651 = vmatprep.subr.bf16.mxu0 %v650_v25 }
  0x10   :  { %570 = vmatmul.mubr.msk.f32.gmra.mrb[2].mxu0 %vm38_vm0, %v29_v30  ;;  %144 = vrot.lane.b32.xlu0 %v849_v31, %s709_s13 }
  0x11   :  { %146 = vrot.lane.b32.xlu1 %v854_v32, %s709_s13  ;;  %580 = vmatprep.mubr.msk.f32.mxu0 %vm38_vm0, %v774_v7 }
  0x12   :  { %673 = vmatpush3.bf16.msra.mxu1 %v670_v24  ;;  %653 = vmatpush3.bf16.msra.mxu0 %v650_v25 }
  0x13   :  { %675 = vmatprep.subr.bf16.mxu1 %v674_v33  ;;  %655 = vmatprep.subr.bf16.mxu0 %v654_v34 }
  0x14   :  { %156 = vrot.lane.b32.xlu0 %v849_v31, %s710_s15 }
  0x15   :  { %158 = vrot.lane.b32.xlu1 %v854_v32, %s710_s15  ;;  %581 = vmatmul.mubr.msk.f32.vlgmr.msra.gmra.mrb[4].mxu0 %vm38_vm0, %v781_v8 }
  0x16   :  { %677 = vmatpush3.bf16.msra.mxu1 %v674_v33  ;;  %657 = vmatpush3.bf16.msra.mxu0 %v654_v34 }
  0x17   :  { %583 = vmatprep.mubr.msk.f32.mxu0 %vm38_vm0, %v849_v31  ;;  %679 = vmatprep.subr.bf16.mxu1 %v678_v39 }
  0x18   :  { %168 = vrot.lane.b32.xlu0 %v849_v31, %s711_s5  ;;  %659 = vmatprep.subr.bf16.mxu0 %v658_v40 }
  0x19   :  { %170 = vrot.lane.b32.xlu1 %v854_v32, %s711_s5  ;;  %584 = vmatmul.mubr.msk.f32.gmra.mrb[6].mxu0 %vm38_vm0, %v854_v32 }
  0x1a   :  { %681 = vmatpush3.bf16.msra.mxu1 %v678_v39  ;;  %661 = vmatpush3.bf16.msra.mxu0 %v658_v40 }
  0x1b   :  { %594 = vmatprep.mubr.msk.f32.mxu0 %vm38_vm0, %v767_v5  ;;  %683 = vmatprep.subr.bf16.mxu1 %v682_v43 }
  0x1d   :  { %595 = vmatmul.mubr.msk.f32.vlgmr.msra.gmra.mrb[4].mxu0 %vm38_vm0, %v27_v22  ;;  %v513_v22 = vld [vmem:[%s949_s6] ss:$0 sm:$0xff] }
  0x1e   :  { %685 = vmatpush3.bf16.msra.mxu1 %v682_v43  ;;  %597 = vmatprep.mubr.msk.f32.mxu0 %vm38_vm0, %v28_v23 }
  0x1f   :  { %687 = vmatprep.subr.bf16.mxu1 %v686_v46 }
  0x21   :  { %598 = vmatmul.mubr.msk.f32.gmra.mrb[6].mxu0 %vm38_vm0, %v29_v30 }
  0x22   :  { %689 = vmatpush3.bf16.msra.mxu1 %v686_v46 }
  0x23   :  { %691 = vmatprep.subr.bf16.mxu1 %v690_v49 }
  0x26   :  { %693 = vmatpush3.bf16.msra.mxu1 %v690_v49 }
  0x76   :  { %v141_v50 = vpop.permute.xlu0 %140 }
  0x77   :  { %v153_v51 = vpop.permute.xlu1 %152  ;;  %v176_v58 = vsel %vm38_vm0, %v774_v7, %v141_v50 }
  0x78   :  { %v181_v62 = vsel %vm180_vm1, %v176_v58, %v153_v51 }
  0x7a   :  { %v143_v52 = vpop.permute.xlu0 %142 }
  0x7b   :  { %v155_v53 = vpop.permute.xlu1 %154  ;;  %v177_v59 = vsel %vm38_vm0, %v781_v8, %v143_v52 }
  0x7c   :  { %v182_v63 = vsel %vm180_vm1, %v177_v59, %v155_v53 }
  0x7e   :  { %v165_v54 = vpop.permute.xlu0 %164 }
  0x7f   :  { %v167_v55 = vpop.permute.xlu1 %166  ;;  %v186_v4 = vsel %vm185_vm2, %v181_v62, %v165_v54 }
  0x80   :  { %v187_v7 = vsel %vm185_vm2, %v182_v63, %v167_v55 }
  0x82   :  { %v145_v56 = vpop.permute.xlu0 %144 }
  0x83   :  { %v147_v57 = vpop.permute.xlu1 %146  ;;  %v178_v0 = vsel %vm38_vm0, %v849_v31, %v145_v56 }
  0x84   :  { %v179_v1 = vsel %vm38_vm0, %v854_v32, %v147_v57 }
  0x86   :  { %v157_v60 = vpop.permute.xlu0 %156 }
  0x87   :  { %v159_v61 = vpop.permute.xlu1 %158  ;;  %v183_v5 = vsel %vm180_vm1, %v178_v0, %v157_v60 }
  0x88   :  { %v184_v9 = vsel %vm180_vm1, %v179_v1, %v159_v61 }
  0x8a   :  { %v169_v6 = vpop.permute.xlu0 %168 }
  0x8b   :  { %v171_v10 = vpop.permute.xlu1 %170  ;;  %v188_v14 = vsel %vm185_vm2, %v183_v5, %v169_v6 }
  0x8c   :  { %v189_v15 = vsel %vm185_vm2, %v184_v9, %v171_v10 }
  0xdf   :  { %v568_v2 = vpop.f32.mrb[0].mxu0 }
  0xe0   :  { %v117_v3 = vpop.f32.mrb[1].mxu0  ;;  %v191_v11 = vmul.f32 %v568_v2, %v187_v7 }
  0xe1   :  { %v190_v8 = vmul.f32 %v186_v4, %v117_v3 }
  0xe3   :  { %v571_v12 = vpop.f32.mrb[2].mxu0  ;;  %632 = vmatprep.mubr.f32.mxu1 %v190_v8 }
  0xe4   :  { %v127_v13 = vpop.f32.mrb[3].mxu0  ;;  %633 = vmatmul.mubr.f32.vlgmr.msra.gmra.mrb[0].mxu1 %v191_v11  ;;  %v193_v17 = vmul.f32 %v571_v12, %v189_v15 }
  0xe5   :  { %v192_v16 = vmul.f32 %v188_v14, %v127_v13 }
  0xe7   :  { %635 = vmatprep.mubr.f32.mxu1 %v192_v16 }
  0xe8   :  { %636 = vmatmul.mubr.f32.gmra.mrb[2].mxu1 %v193_v17 }
  0xf0   :  { %v596_v18 = vpop.f32.mrb[4].mxu0 }
  0xf1   :  { %v377_v19 = vpop.f32.mrb[5].mxu0  ;;  %v694_v23 = vadd.f32 %v596_v18, %v513_v22 }
  0xf2   :  { %v696_v24 = vadd.f32 %v513_v22, %v377_v19 }
  0xf4   :  { %v599_v20 = vpop.f32.mrb[6].mxu0 }
  0xf5   :  { %v387_v21 = vpop.f32.mrb[7].mxu0  ;;  %v698_v29 = vadd.f32 %v599_v20, %v513_v22 }
  0xf6   :  { %v700_v30 = vadd.f32 %v513_v22, %v387_v21 }
 0x1b7   :  { %v634_v25 = vpop.f32.mrb[0].mxu1 }
 0x1b8   :  { %v695_v26 = vadd.f32 %v694_v23, %v634_v25  ;;  %v473_v27 = vpop.f32.mrb[1].mxu1 }
 0x1b9   :  { %v697_v28 = vadd.f32 %v696_v24, %v473_v27 }
 0x1ba   :  { %494 = vst.msk [vmem:[%s950_s7 + $0x8] sm:$0xff] %vm492_vm3, %v695_v26 }
 0x1bb   :  { %493 = vst.msk [vmem:[%s950_s7] sm:$0xff] %vm492_vm3, %v697_v28  ;;  %v637_v31 = vpop.f32.mrb[2].mxu1 }
 0x1bc   :  { %v699_v32 = vadd.f32 %v698_v29, %v637_v31  ;;  %v483_v33 = vpop.f32.mrb[3].mxu1 }
 0x1bd   :  { %v701_v34 = vadd.f32 %v700_v30, %v483_v33 }
 0x1be   :  { %496 = vst.msk [vmem:[%s950_s7 + $0x18] sm:$0xff] %vm492_vm3, %v699_v32 }
 0x1bf   :  { %495 = vst.msk [vmem:[%s950_s7 + $0x10] sm:$0xff] %vm492_vm3, %v701_v34 }

</bundles_post_ra>
